<compile_context>
chip_gen: v7x
topology: tpu7x:2x2x1
jax: 0.10.0
libtpu: 0.0.40
codegen_flags: <defaults>
</compile_context>

<pallas_src>
import functools

import jax
import jax.numpy as jnp
from jax.experimental import pallas as pl
from jax.experimental.pallas import tpu as pltpu


def _vmem_capacity_bytes():
    """Per-TensorCore VMEM capacity; falls back to the 128 MiB v5e/v6e value."""
    try:
        return int(pltpu.get_tpu_info().vmem_capacity_bytes)
    except Exception:  # interpret mode / very old jax — use the conservative-enough default
        return 128 << 20


def _pick_block_rows(batch, classes, itemsize, vmem_capacity):
    """Largest sublane-aligned row tile whose real working set fits VMEM.

    Counts both the double-buffered input blocks AND the ~8 live (TB, C) f32
    temporaries the kernel body keeps (f32 upcasts of the two logit tiles,
    xh, xs, ts, exp_t, elementwise products).
    """
    is_v7x = vmem_capacity <= (64 << 20)
    if is_v7x:                       # 64 MiB per TensorCore: stay conservative
        budget = 14 << 20
        row_cap = 1024
    else:                            # v5e / v6e: 128 MiB VMEM, go bigger (HBM-bound)
        budget = 48 << 20
        row_cap = 4096

    bytes_per_row = (2 * 2 * classes * itemsize   # 2 operands x 2 pipeline buffers
                     + 8 * classes * 4)           # single-buffered f32 temporaries
    tb = budget // max(bytes_per_row, 1)
    tb = max(8, min(int(tb), row_cap, max(batch, 8)))

    if batch <= tb:
        if is_v7x and batch > 8:
            # Guarantee >= 2 grid steps so ("parallel",) uses both TensorCores.
            half = ((pl.cdiv(batch, 2) + 7) // 8) * 8
            if half < batch:
                return half
        return batch                 # full-array block is always legal
    return (tb // 8) * 8             # sublane-aligned tile


def _kd_loss_kernel(out_ref, teach_ref, picked_ref, loss_ref, *,
                    temperature, batch_size, block_rows, fast_exp_bf16):
    x = out_ref[...].astype(jnp.float32)     # (TB, C) student logits
    t = teach_ref[...].astype(jnp.float32)   # (TB, C) teacher logits
    picked = picked_ref[...]                 # (TB, 1) student logit at target class

    TB, _ = x.shape
    T = jnp.float32(temperature)
    inv_T = jnp.float32(1.0 / float(temperature))
    inv_B = jnp.float32(1.0 / float(batch_size))

    def _exp(v):
        # Optional bf16 EUP path (v6e/v7x ~2x transcendental throughput);
        # row sums below still accumulate in f32.
        if fast_exp_bf16:
            return jnp.exp(v.astype(jnp.bfloat16)).astype(jnp.float32)
        return jnp.exp(v)

    # ---- student: shared row-max for both temperatures (max(x/T) = max(x)/T)
    row_max_x = jnp.max(x, axis=1, keepdims=True)              # (TB, 1)
    xh = x - row_max_x                                          # CE logits
    xs = xh * inv_T                                             # tempered logits

    lse_xs = jnp.log(jnp.sum(_exp(xs), axis=1, keepdims=True))  # (TB, 1)
    lse_xh = jnp.log(jnp.sum(_exp(xh), axis=1, keepdims=True))

    # ---- teacher tempered softmax pieces -----------------------------------
    row_max_t = jnp.max(t, axis=1, keepdims=True)
    ts = (t - row_max_t) * inv_T
    exp_t = _exp(ts)
    sum_t = jnp.sum(exp_t, axis=1, keepdims=True)
    inv_sum_t = pl.reciprocal(sum_t, approx=False)              # exact: (TB,1) is cheap
    lse_t = jnp.log(sum_t)

    # ---- soft loss per row:
    # sum_c q*(log q - log p) = (1/sum_t)*sum_c exp_t*(ts - xs) - (lse_t - lse_xs)
    qdot = jnp.sum(exp_t * (ts - xs), axis=1, keepdims=True)    # (TB, 1)
    kl_row = qdot * inv_sum_t - (lse_t - lse_xs)

    # ---- hard loss per row: logsumexp(xh) - xh[target] ---------------------
    nll_row = lse_xh - (picked - row_max_x)

    contrib = kl_row * (T * T) + nll_row                        # (TB, 1)

    # Mask rows of a padded last tile (also kills NaN/Inf from pad garbage).
    row_ids = (pl.program_id(0) * block_rows
               + jax.lax.broadcasted_iota(jnp.int32, (TB, 1), 0))
    contrib = jnp.where(row_ids < batch_size, contrib, 0.0)

    # Lane-dense unmasked store of this tile's partial sum.
    loss_ref[...] = jnp.broadcast_to(jnp.sum(contrib) * inv_B, loss_ref.shape)


def knowledge_distillation_loss(outputs, targets, teacher_outputs,
                                temperature=3, block_rows=None,
                                fast_exp_bf16=False):
    """outputs, teacher_outputs: (B, C) float; targets: (B,) int. Returns scalar f32."""
    B, C = outputs.shape
    assert teacher_outputs.shape == (B, C)

    # Hoist the target gather out of the kernel: only the picked student logit
    # is needed per row (removes iota/compare/select + one lane reduction).
    tgt = targets.astype(jnp.int32).reshape(B, 1)
    picked = jnp.take_along_axis(outputs, tgt, axis=1).astype(jnp.float32)  # (B, 1)

    itemsize = jnp.dtype(outputs.dtype).itemsize
    vmem_capacity = _vmem_capacity_bytes()
    tb = block_rows if block_rows is not None else _pick_block_rows(
        B, C, itemsize, vmem_capacity)
    g = pl.cdiv(B, tb)

    # VMEM accounting: pipelined logit blocks + in-kernel f32 temps + small blocks.
    tile_bytes = (2 * 2 * tb * C * itemsize     # 2 operands x 2 pipeline buffers
                  + 8 * tb * C * 4              # f32 temporaries in the body
                  + 2 * 2 * tb * 4              # picked-logit blocks
                  + 2 * 8 * 128 * 4)            # output blocks
    limit_cap = (44 << 20) if vmem_capacity <= (64 << 20) else (96 << 20)
    vmem_limit = int(min(max(tile_bytes * 5 // 4, 32 << 20), limit_cap))

    cost = pl.CostEstimate(
        flops=10 * B * C,
        transcendentals=3 * B * C,
        bytes_accessed=2 * B * C * itemsize + B * 8 + g * 8 * 128 * 4,
    )

    kernel = functools.partial(
        _kd_loss_kernel,
        temperature=temperature,
        batch_size=B,
        block_rows=tb,
        fast_exp_bf16=fast_exp_bf16,
    )

    partials = pl.pallas_call(
        kernel,
        out_shape=jax.ShapeDtypeStruct((g, 8, 128), jnp.float32),
        grid=(g,),
        in_specs=[
            pl.BlockSpec((tb, C), lambda i: (i, 0)),
            pl.BlockSpec((tb, C), lambda i: (i, 0)),
            pl.BlockSpec((tb, 1), lambda i: (i, 0)),
        ],
        out_specs=pl.BlockSpec((1, 8, 128), lambda i: (i, 0, 0)),
        compiler_params=pltpu.CompilerParams(
            dimension_semantics=("parallel",),   # distinct out block per step -> megacore-safe
            vmem_limit_bytes=vmem_limit,
        ),
        cost_estimate=cost,
    )(outputs, teacher_outputs, picked)

    # Each tile broadcast its partial sum across its (8,128) block; take one lane.
    return jnp.sum(partials[:, 0, 0])


def _reference_loss(outputs, targets, teacher_outputs, temperature=3):
    # Pure-JAX reference mirroring the PyTorch module.
    T = float(temperature)
    log_p = jax.nn.log_softmax(outputs / T, axis=1)
    q = jax.nn.softmax(teacher_outputs / T, axis=1)
    log_q = jax.nn.log_softmax(teacher_outputs / T, axis=1)
    soft = jnp.sum(q * (log_q - log_p)) / outputs.shape[0] * (T * T)
    log_sm = jax.nn.log_softmax(outputs, axis=1)
    ce = -jnp.mean(jnp.take_along_axis(log_sm, targets[:, None], axis=1))
    return soft + ce


if __name__ == "__main__":
    key = jax.random.PRNGKey(0)
    k1, k2, k3 = jax.random.split(key, 3)

    B, C = 8, 32  # batch=8, num_classes=32
    outputs = jax.random.normal(k1, (B, C), dtype=jnp.float32)
    teacher_outputs = jax.random.normal(k2, (B, C), dtype=jnp.float32)
    targets = jax.random.randint(k3, (B,), 0, C, dtype=jnp.int32)

    loss = knowledge_distillation_loss(outputs, targets, teacher_outputs, temperature=3)
    loss = jax.block_until_ready(loss)

    ref = _reference_loss(outputs, targets, teacher_outputs, temperature=3)
    assert jnp.allclose(loss, ref, rtol=1e-5, atol=1e-5), (loss, ref)

    print("KERNEL_OK")
</pallas_src>

<mosaic_0001>
module attributes {stable_mosaic.version = 11 : i64} {
  func.func @_kd_loss_kernel(%arg0: i32, %arg1: memref<8x32xf32, #tpu.memory_space<vmem>>, %arg2: memref<8x32xf32, #tpu.memory_space<vmem>>, %arg3: memref<8x1xf32, #tpu.memory_space<vmem>>, %arg4: memref<1x8x128xf32, #tpu.memory_space<vmem>>) attributes {dimension_semantics = [#tpu.dimension_semantics<parallel>], iteration_bounds = array<i64: 1>, scalar_prefetch = 0 : i64, scratch_operands = 0 : i64, tpu.core_type = #tpu.core_type<tc>, window_params = [{transform_indices = @transform_0, window_bounds = array<i64: 8, 32>}, {transform_indices = @transform_1, window_bounds = array<i64: 8, 32>}, {transform_indices = @transform_2, window_bounds = array<i64: 8, 1>}, {transform_indices = @transform_3, window_bounds = array<i64: 1, 8, 128>}]} {
    %c0 = arith.constant 0 : index
    %c0_0 = arith.constant 0 : index
    %0 = vector.load %arg1[%c0, %c0_0] : memref<8x32xf32, #tpu.memory_space<vmem>>, vector<8x32xf32>
    %c0_1 = arith.constant 0 : index
    %c0_2 = arith.constant 0 : index
    %1 = vector.load %arg2[%c0_1, %c0_2] : memref<8x32xf32, #tpu.memory_space<vmem>>, vector<8x32xf32>
    %c0_3 = arith.constant 0 : index
    %c0_4 = arith.constant 0 : index
    %2 = vector.load %arg3[%c0_3, %c0_4] : memref<8x1xf32, #tpu.memory_space<vmem>>, vector<8x1xf32>
    %cst = arith.constant dense<0xFF800000> : vector<8xf32>
    %3 = vector.multi_reduction <maximumf>, %0, %cst [1] : vector<8x32xf32> to vector<8xf32>
    %4 = vector.shape_cast %3 : vector<8xf32> to vector<8x1xf32>
    %5 = vector.broadcast %4 : vector<8x1xf32> to vector<8x32xf32>
    %6 = arith.subf %0, %5 : vector<8x32xf32>
    %cst_5 = arith.constant 0.333333343 : f32
    %7 = vector.broadcast %cst_5 : f32 to vector<8x32xf32>
    %8 = arith.mulf %6, %7 : vector<8x32xf32>
    %9 = math.exp %8 : vector<8x32xf32>
    %cst_6 = arith.constant dense<0.000000e+00> : vector<8xf32>
    %10 = vector.multi_reduction <add>, %9, %cst_6 [1] : vector<8x32xf32> to vector<8xf32>
    %11 = vector.shape_cast %10 : vector<8xf32> to vector<8x1xf32>
    %12 = math.log %11 : vector<8x1xf32>
    %13 = math.exp %6 : vector<8x32xf32>
    %cst_7 = arith.constant dense<0.000000e+00> : vector<8xf32>
    %14 = vector.multi_reduction <add>, %13, %cst_7 [1] : vector<8x32xf32> to vector<8xf32>
    %15 = vector.shape_cast %14 : vector<8xf32> to vector<8x1xf32>
    %16 = math.log %15 : vector<8x1xf32>
    %cst_8 = arith.constant dense<0xFF800000> : vector<8xf32>
    %17 = vector.multi_reduction <maximumf>, %1, %cst_8 [1] : vector<8x32xf32> to vector<8xf32>
    %18 = vector.shape_cast %17 : vector<8xf32> to vector<8x1xf32>
    %19 = vector.broadcast %18 : vector<8x1xf32> to vector<8x32xf32>
    %20 = arith.subf %1, %19 : vector<8x32xf32>
    %cst_9 = arith.constant 0.333333343 : f32
    %21 = vector.broadcast %cst_9 : f32 to vector<8x32xf32>
    %22 = arith.mulf %20, %21 : vector<8x32xf32>
    %23 = math.exp %22 : vector<8x32xf32>
    %cst_10 = arith.constant dense<0.000000e+00> : vector<8xf32>
    %24 = vector.multi_reduction <add>, %23, %cst_10 [1] : vector<8x32xf32> to vector<8xf32>
    %25 = vector.shape_cast %24 : vector<8xf32> to vector<8x1xf32>
    %26 = tpu.reciprocal %25 : vector<8x1xf32> -> vector<8x1xf32>
    %27 = math.log %25 : vector<8x1xf32>
    %28 = arith.subf %22, %8 : vector<8x32xf32>
    %29 = arith.mulf %23, %28 : vector<8x32xf32>
    %cst_11 = arith.constant dense<0.000000e+00> : vector<8xf32>
    %30 = vector.multi_reduction <add>, %29, %cst_11 [1] : vector<8x32xf32> to vector<8xf32>
    %31 = vector.shape_cast %30 : vector<8xf32> to vector<8x1xf32>
    %32 = arith.mulf %31, %26 : vector<8x1xf32>
    %33 = arith.subf %27, %12 : vector<8x1xf32>
    %34 = arith.subf %32, %33 : vector<8x1xf32>
    %35 = arith.subf %2, %4 : vector<8x1xf32>
    %36 = arith.subf %16, %35 : vector<8x1xf32>
    %cst_12 = arith.constant 3.000000e+00 : f32
    %cst_13 = arith.constant 3.000000e+00 : f32
    %37 = arith.mulf %cst_12, %cst_13 : f32
    %38 = vector.broadcast %37 : f32 to vector<8x1xf32>
    %39 = arith.mulf %34, %38 : vector<8x1xf32>
    %40 = arith.addf %39, %36 : vector<8x1xf32>
    %c8_i32 = arith.constant 8 : i32
    %41 = arith.muli %arg0, %c8_i32 : i32
    %42 = tpu.iota {dimensions = array<i32: 0>} : vector<8x1xi32>
    %43 = vector.broadcast %41 : i32 to vector<8x1xi32>
    %44 = arith.addi %43, %42 : vector<8x1xi32>
    %c8_i32_14 = arith.constant 8 : i32
    %45 = vector.broadcast %c8_i32_14 : i32 to vector<8x1xi32>
    %46 = arith.cmpi slt, %44, %45 : vector<8x1xi32>
    %cst_15 = arith.constant 0.000000e+00 : f32
    %47 = vector.broadcast %cst_15 : f32 to vector<8x1xf32>
    %48 = arith.select %46, %40, %47 : vector<8x1xi1>, vector<8x1xf32>
    %49 = vector.shape_cast %48 : vector<8x1xf32> to vector<1x8x1xf32>
    %cst_16 = arith.constant dense<0.000000e+00> : vector<1xf32>
    %50 = vector.multi_reduction <add>, %49, %cst_16 [1, 2] : vector<1x8x1xf32> to vector<1xf32>
    %51 = vector.shape_cast %50 : vector<1xf32> to vector<1x1x1xf32>
    %52 = vector.extract %51[0, 0, 0] : f32 from vector<1x1x1xf32>
    %cst_17 = arith.constant 1.250000e-01 : f32
    %53 = arith.mulf %52, %cst_17 : f32
    %54 = vector.broadcast %53 : f32 to vector<1x8x128xf32>
    %c0_18 = arith.constant 0 : index
    %c0_19 = arith.constant 0 : index
    %c0_20 = arith.constant 0 : index
    %55 = vector.load %arg4[%c0_18, %c0_19, %c0_20] : memref<1x8x128xf32, #tpu.memory_space<vmem>>, vector<1x8x128xf32>
    tpu.vector_store %arg4[%c0_18, %c0_19, %c0_20], %54 {strides = array<i32>} : memref<1x8x128xf32, #tpu.memory_space<vmem>>, vector<1x8x128xf32>,
    return
  }
  func.func @transform_0(%arg0: i32) -> (i32, i32) {
    %c0_i32 = arith.constant 0 : i32
    %c0_i32_0 = arith.constant 0 : i32
    return %arg0, %c0_i32 : i32, i32
  }
  func.func @transform_1(%arg0: i32) -> (i32, i32) {
    %c0_i32 = arith.constant 0 : i32
    %c0_i32_0 = arith.constant 0 : i32
    return %arg0, %c0_i32 : i32, i32
  }
  func.func @transform_2(%arg0: i32) -> (i32, i32) {
    %c0_i32 = arith.constant 0 : i32
    %c0_i32_0 = arith.constant 0 : i32
    return %arg0, %c0_i32 : i32, i32
  }
  func.func @transform_3(%arg0: i32) -> (i32, i32, i32) {
    %c0_i32 = arith.constant 0 : i32
    %c0_i32_0 = arith.constant 0 : i32
    %c0_i32_1 = arith.constant 0 : i32
    return %arg0, %c0_i32, %c0_i32_0 : i32, i32, i32
  }
}

</mosaic_0001>

<bundles_post_ra>
// kernel: tpu_custom_call.1
= control target key start
LH: loop header
LB: loop body
LE: loop exit
PB: predicated region body
PF: predicated region fallthrough
CT: control target
= control target key end

     0   :  { %8 = vsyncpa [#allocation3], 0  ;;  %s235_s0 = inlined_call_operand.vmem [shape: f32[8,32], index: 0, kind: input, shape index: {}]   ;;  %s236_s1 = inlined_call_operand.hbm [shape: f32[8,32], index: 1, kind: input, shape index: {}]   ;;  %s237_s2 = inlined_call_operand.vmem [shape: f32[8,1], index: 2, kind: input, shape index: {}]   ;;  %s238_s3 = inlined_call_operand.hbm [shape: f32[1,8,128], index: 3, kind: output, shape index: {}]  }
   0x1   :  { %9 = vsyncpa [#allocation4], 0  ;;  %s177_s12 = smov [#allocation2]   ;;  %s129_s16 = scalar_lea.hbm %s236_s1, 128 }
   0x2   :  { %s18_s13 = sshll.u32 %s177_s12, 4  ;;  %p130_p0 = scmp.ne.s32.totalorder %s236_s1, %s129_s16  ;;  %s19_s13 = int_to_ptr.vmem [resolvable:$true] %s18_s13 }
   0x3   :  { %p133_p1 = scmp.lt.u32.totalorder %s129_s16, %s236_s1 }
   0x5   :  { %p135_p2 = pnand %p133_p1, %p130_p0 }
   0x7   :  { %138 = shalt.err (!%p135_p2)
}
   0x8   :  { %s139_s21 = scalar_lea.vmem %s19_s13, 128  ;;  %p144_p4 = scmp.lt.s32.totalorder %s19_s13, %s19_s13 }
   0x9   :  { %p140_p3 = scmp.ne.s32.totalorder %s19_s13, %s139_s21  ;;  %p145_p5 = scmp.lt.s32.totalorder %s139_s21, %s139_s21 }
   0xb   :  { %p146_p6 = por %p145_p5, %p144_p4 }
   0xd   :  { %p147_p7 = pnand %p146_p6, %p140_p3 }
   0xf   :  { %150 = shalt.err (!%p147_p7)
}
  0x10   :  { %21 = dma.hbm_to_vmem [thread:$0]  %s236_s1, 128, %s19_s13, [#allocation3]  }
  0x11   :  { %173 = dma.done.wait [#allocation3], 128  }
  0x12   :  { %174 = vsyncadd [#allocation3], 4294967168  ;;  %vm30_vm0 = vcmask 261120   ;;  %v27_v0 = vld [vmem:[%s235_s0] sm:$0xff]  ;;  %vm82_vm1 = vcmask 7168  }
  0x13   :  { %v28_v1 = vld [vmem:[#allocation2] sm:$0xff]  ;;  %v31_v2 = vsel %vm30_vm0, %v27_v0, -inf }
  0x14   :  { %32 = vmax.xlane.f32.xlu0 %v31_v2  ;;  %v50_v3 = vsel %vm30_vm0, %v28_v1, -inf  ;;  %v29_v31 = vld [vmem:[%s237_s2] sm:$0xff]  ;;  %s178_s2 = smov [#allocation5]  }
  0x15   :  { %s102_s26 = sshll.u32 %s178_s2, 4  ;;  %s103_s26 = int_to_ptr.vmem [resolvable:$true] %s102_s26 }
  0x16   :  { %s151_s29 = scalar_lea.vmem %s103_s26, 128  ;;  %p156_p9 = scmp.lt.s32.totalorder %s103_s26, %s103_s26 }
  0x17   :  { %p152_p8 = scmp.ne.s32.totalorder %s103_s26, %s151_s29  ;;  %p157_p10 = scmp.lt.s32.totalorder %s151_s29, %s151_s29 }
  0x18   :  { %51 = vmax.xlane.f32.xlu0 %v50_v3 }
  0x19   :  { %p158_p11 = por %p157_p10, %p156_p9 }
  0x1b   :  { %p159_p12 = pnand %p158_p11, %p152_p8 }
  0xa1   :  { %v33_v4 = vpop.xlane.xlu0 %32 }
  0xa2   :  { %v34_v5 = vsub.f32 %v27_v0, %v33_v4  ;;  %v71_v36 = vsub.f32 %v29_v31, %v33_v4 }
  0xa4   :  { %v35_v6 = vmul.f32 0.33333334, %v34_v5  ;;  %v43_v7 = vmul.f32 1.442695, %v34_v5 }
  0xa5   :  { %v52_v8 = vpop.xlane.xlu0 %51 }
  0xa6   :  { %v36_v9 = vmul.f32 1.442695, %v35_v6  ;;  %115 = vpow2.f32 %v43_v7  ;;  %v53_v10 = vsub.f32 %v28_v1, %v52_v8 }
  0xa8   :  { %117 = vpow2.f32 %v36_v9  ;;  %v54_v11 = vmul.f32 0.33333334, %v53_v10 }
  0xaa   :  { %v55_v12 = vmul.f32 1.442695, %v54_v11  ;;  %v63_v17 = vsub.f32 %v54_v11, %v35_v6 }
  0xac   :  { %119 = vpow2.f32 %v55_v12 }
  0xb0   :  { %v116_v13 = vpop.eup %115 }
  0xb1   :  { %v45_v14 = vsel %vm30_vm0, %v116_v13, 0.0 }
  0xb2   :  { %v118_v15 = vpop.eup %117  ;;  %46 = vadd.xlane.f32.xlu0 %v45_v14 }
  0xb3   :  { %v38_v16 = vsel %vm30_vm0, %v118_v15, 0.0 }
  0xb4   :  { %39 = vadd.xlane.f32.xlu1 %v38_v16 }
  0xb6   :  { %v120_v18 = vpop.eup %119 }
  0xb7   :  { %v57_v19 = vsel %vm30_vm0, %v120_v18, 0.0  ;;  %v64_v20 = vmul.f32 %v120_v18, %v63_v17 }
  0xb8   :  { %58 = vadd.xlane.f32.xlu1 %v57_v19 }
  0xb9   :  { %v65_v21 = vsel %vm30_vm0, %v64_v20, 0.0 }
  0xbc   :  { %66 = vadd.xlane.f32.xlu1 %v65_v21 }
 0x13f   :  { %v47_v22 = vpop.xlane.xlu0 %46 }
 0x140   :  { %121 = vlog2.f32 %v47_v22 }
 0x141   :  { %v40_v23 = vpop.xlane.xlu1 %39 }
 0x142   :  { %123 = vlog2.f32 %v40_v23 }
 0x145   :  { %v59_v24 = vpop.xlane.xlu1 %58 }
 0x146   :  { %125 = vrcp.f32 %v59_v24 }
 0x147   :  { %127 = vlog2.f32 %v59_v24 }
 0x149   :  { %v67_v32 = vpop.xlane.xlu1 %66 }
 0x14a   :  { %v122_v25 = vpop.eup %121 }
 0x14b   :  { %v49_v33 = vmul.f32 0.6931472, %v122_v25 }
 0x14c   :  { %v124_v26 = vpop.eup %123 }
 0x14d   :  { %v42_v29 = vmul.f32 0.6931472, %v124_v26  ;;  %v72_v39 = vsub.f32 %v49_v33, %v71_v36 }
 0x150   :  { %v126_v27 = vpop.eup %125 }
 0x151   :  { %v128_v28 = vpop.eup %127  ;;  %v68_v35 = vmul.f32 %v126_v27, %v67_v32 }
 0x152   :  { %v62_v30 = vmul.f32 0.6931472, %v128_v28 }
 0x154   :  { %v69_v34 = vsub.f32 %v62_v30, %v42_v29 }
 0x156   :  { %v70_v37 = vsub.f32 %v68_v35, %v69_v34 }
 0x158   :  { %v73_v38 = vmul.f32 9.0, %v70_v37 }
 0x15a   :  { %v74_v40 = vadd.f32 %v73_v38, %v72_v39 }
 0x15c   :  { %v83_v41 = vsel %vm82_vm1, %v74_v40, 0.0 }
 0x15d   :  { %84 = vadd.xlane.f32.xlu0 %v83_v41 }
 0x1ea   :  { %v85_v42 = vpop.xlane.xlu0 %84 }
 0x1eb   :  { %v86_v43 = vrot.slane %v85_v42, 4 }
 0x1ed   :  { %v87_v44 = vadd.f32 %v86_v43, %v85_v42 }
 0x1ef   :  { %v88_v45 = vrot.slane %v87_v44, 2 }
 0x1f1   :  { %v89_v46 = vadd.f32 %v88_v45, %v87_v44 }
 0x1f3   :  { %v90_v47 = vrot.slane %v89_v46, 1 }
 0x1f5   :  { %v91_v48 = vadd.f32 %v90_v47, %v89_v46 }
 0x1f7   :  { %111 = vpush %v91_v48 }
 0x228   :  { %s112_s27 = spop %111 }
 0x229   :  { %s93_s28 = smul.f32 0.125, %s112_s27 }
 0x22b   :  { %v94_v49 = vstv %s93_s28 }
 0x22c   :  { %95 = vst [vmem:[#allocation5] sm:$0xff] %v94_v49 }
 0x22d   :  { %162 = shalt.err (!%p159_p12)
}
 0x22e   :  { %s163_s5 = scalar_lea.hbm %s238_s3, 128 }
 0x22f   :  { %p164_p13 = scmp.ne.s32.totalorder %s238_s3, %s163_s5  ;;  %p167_p0 = scmp.lt.u32.totalorder %s163_s5, %s238_s3 }
 0x231   :  { %p169_p1 = pnand %p167_p0, %p164_p13 }
 0x233   :  { %172 = shalt.err (!%p169_p1)
}
 0x234   :  { %105 = dma.vmem_to_hbm [thread:$0]  %s103_s26, 128, %s238_s3, [#allocation4]  }
 0x235   :  { %175 = dma.done.wait [#allocation4], 128  }
 0x236   :  { %176 = vsyncadd [#allocation4], 4294967168 }
 0x237   :  { %109 = vsyncpa [#allocation3], 1 }
 0x238   :  { %110 = vsyncpa [#allocation4], 1 }

</bundles_post_ra>
